<compile_context>
chip_gen: v7x
topology: tpu7x:2x2x1
jax: 0.10.0
libtpu: 0.0.40
codegen_flags: <defaults>
</compile_context>

<pallas_src>
import jax
import jax.numpy as jnp
from jax.experimental import pallas as pl
from jax.experimental.pallas import tpu as pltpu


# --------------------------------------------------------------------------- #
# helpers
# --------------------------------------------------------------------------- #
def _round_up(x: int, m: int) -> int:
    return ((x + m - 1) // m) * m


def _cdiv(a: int, b: int) -> int:
    return (a + b - 1) // b


def _pad_2d(a, rows: int, cols: int):
    """Zero-pad a 2-D array up to (rows, cols); no-op when already that shape."""
    R, C = a.shape
    if (R, C) == (rows, cols):
        return a
    return jnp.zeros((rows, cols), a.dtype).at[:R, :C].set(a)


def _vmem_capacity_bytes() -> int:
    """Per-TensorCore VMEM capacity; conservative 64 MiB (v7x) fallback."""
    try:
        info = pltpu.get_tpu_info()
        for name in ("vmem_capacity_bytes", "vmem_size_bytes", "vmem_bytes"):
            v = getattr(info, name, None)
            if v:
                return int(v)
    except Exception:
        pass
    return 64 * 1024 * 1024


def _tpu_layout():
    """Return (capacity, budget, vmem_limit, cores_per_chip heuristic)."""
    cap = _vmem_capacity_bytes()
    # 64 MiB-per-core VMEM => v7x-class chip with 2 TensorCores sharing HBM.
    cores = 2 if cap <= 64 * 1024 * 1024 else 1
    budget = (cap * 3) // 4                      # headroom for compiler scratch
    vmem_limit = max((cap * 7) // 8, 32 * 1024 * 1024)
    return cap, budget, vmem_limit, cores


# --------------------------------------------------------------------------- #
# kernels
# --------------------------------------------------------------------------- #
def _so_matmul_resident_kernel(x_ref, wt_ref, o_ref):
    # out_tile = X_tile @ W^T, with W^T already stored as (K, N): canonical
    # MXU orientation, no per-step transpose work.
    o_ref[...] = jnp.dot(
        x_ref[...], wt_ref[...], preferred_element_type=jnp.float32
    ).astype(o_ref.dtype)


def _so_matmul_tiled_kernel(x_ref, wt_ref, o_ref, acc_ref):
    # 3-D grid (M, N, K) with K innermost ("arbitrary"): accumulate in f32
    # scratch, init at k == 0, write out at the last k step.
    @pl.when(pl.program_id(2) == 0)
    def _init():
        acc_ref[...] = jnp.zeros_like(acc_ref)

    acc_ref[...] += jnp.dot(
        x_ref[...], wt_ref[...], preferred_element_type=jnp.float32
    )

    @pl.when(pl.program_id(2) == pl.num_programs(2) - 1)
    def _finalize():
        o_ref[...] = acc_ref[...].astype(o_ref.dtype)


# --------------------------------------------------------------------------- #
# pallas wrappers
# --------------------------------------------------------------------------- #
def _so_resident(x, wT, M, K, N, out_dtype, *, tm, budget, vmem_limit, cores):
    """Batch-only tiling with the whole (padded) W^T resident in VMEM."""
    itemsize = jnp.dtype(x.dtype).itemsize

    # Lane-dense feature dims only when needed (no pad for multiples of 128).
    Kp = K if K % 128 == 0 else _round_up(K, 128)
    Np = N if N % 128 == 0 else _round_up(N, 128)

    x_p = _pad_2d(x, M, Kp)            # pads K only; M is never padded
    wT_p = _pad_2d(wT, Kp, Np)

    w_bytes = Kp * Np * itemsize
    # The weight block index never changes across the grid; single-buffer it
    # once the second pipeline buffer is a meaningful VMEM cost.
    single_buffer_w = w_bytes > (2 * 1024 * 1024)
    w_buffers = 1 if single_buffer_w else 2

    def vmem_bytes(t):
        return (w_buffers * w_bytes
                + 2 * t * Kp * itemsize       # double-buffered X tiles
                + 2 * t * Np * itemsize)      # double-buffered out tiles

    tm_eff = min(_round_up(tm, 8), _round_up(M, 8))
    while tm_eff > 8 and vmem_bytes(tm_eff) > budget:
        tm_eff = max(8, _round_up(tm_eff // 2, 8))

    # On 2-TensorCore chips (v7x) give each core >= 2 grid steps so per-core
    # DMA/compute overlap survives megacore sharding; on single-TC chips
    # (v5e/v6e) keep tiles as big as possible instead.
    if cores > 1:
        min_steps = 2 * cores
        while tm_eff > 256 and _cdiv(M, tm_eff) < min_steps:
            tm_eff = max(256, _round_up(tm_eff // 2, 8))

    grid = (_cdiv(M, tm_eff),)   # ragged last M tile handled by Pallas masking

    w_spec_kwargs = {}
    if single_buffer_w:
        w_spec_kwargs["pipeline_mode"] = pl.Buffered(1)

    out_p = pl.pallas_call(
        _so_matmul_resident_kernel,
        out_shape=jax.ShapeDtypeStruct((M, Np), out_dtype),
        grid_spec=pltpu.PrefetchScalarGridSpec(
            num_scalar_prefetch=0,
            grid=grid,
            in_specs=[
                # X tiled over the batch dim; (padded) feature dim kept whole.
                pl.BlockSpec((tm_eff, Kp), lambda i: (i, 0)),
                # Full (padded) W^T resident in VMEM across the whole grid.
                pl.BlockSpec((Kp, Np), lambda i: (0, 0), **w_spec_kwargs),
            ],
            out_specs=pl.BlockSpec((tm_eff, Np), lambda i: (i, 0)),
        ),
        compiler_params=pltpu.CompilerParams(
            dimension_semantics=("parallel",),
            vmem_limit_bytes=int(vmem_limit),
        ),
    )(x_p, wT_p)

    if Np != N:
        out_p = out_p[:, :N]
    return out_p


def _so_tiled(x, wT, M, K, N, out_dtype, *, budget, vmem_limit, cores):
    """K/N-tiled path for weights too large to keep resident in VMEM."""
    itemsize = jnp.dtype(x.dtype).itemsize

    # tn / tk multiples of 256 fill the 2x256x256 MXUs on v6e/v7x
    # (128-multiples already suffice on v5e's 4x128x128 MXU).
    tm = min(512, _round_up(M, 8))
    tn = 512
    tk = 512

    def vmem_bytes(tm_, tn_, tk_):
        return (2 * tm_ * tk_ * itemsize      # X tiles
                + 2 * tk_ * tn_ * itemsize    # W^T tiles
                + 2 * tm_ * tn_ * itemsize    # out tiles
                + tm_ * tn_ * 4)              # f32 accumulator scratch

    while vmem_bytes(tm, tn, tk) > budget and (tm > 256 or tn > 256 or tk > 256):
        if tk > 256:
            tk //= 2
        elif tn > 256:
            tn //= 2
        else:
            tm = max(256, _round_up(tm // 2, 8))

    # Zero-pad K/N up to tile multiples (exact: padded K columns are zero in
    # both operands, padded N columns of W^T are zero).  M is never padded;
    # the ragged last batch tile is masked by Pallas on store.
    Kp = _round_up(K, tk)
    Np = _round_up(N, tn)
    x_p = _pad_2d(x, M, Kp)
    wT_p = _pad_2d(wT, Kp, Np)

    grid = (_cdiv(M, tm), Np // tn, Kp // tk)

    out_p = pl.pallas_call(
        _so_matmul_tiled_kernel,
        out_shape=jax.ShapeDtypeStruct((M, Np), out_dtype),
        grid_spec=pltpu.PrefetchScalarGridSpec(
            num_scalar_prefetch=0,
            grid=grid,
            in_specs=[
                pl.BlockSpec((tm, tk), lambda i, j, k: (i, k)),
                pl.BlockSpec((tk, tn), lambda i, j, k: (k, j)),
            ],
            out_specs=pl.BlockSpec((tm, tn), lambda i, j, k: (i, j)),
            scratch_shapes=[pltpu.VMEM((tm, tn), jnp.float32)],
        ),
        compiler_params=pltpu.CompilerParams(
            dimension_semantics=("parallel", "parallel", "arbitrary"),
            vmem_limit_bytes=int(vmem_limit),
        ),
    )(x_p, wT_p)

    if Np != N:
        out_p = out_p[:, :N]
    return out_p


def _so_layer_forward_pallas(x, weight, *, tm=None, compute_dtype=None,
                             _force_path=None):
    """out = x @ weight.T via pallas_call, choosing resident vs tiled weight."""
    M, K = x.shape
    N, K2 = weight.shape
    assert K == K2, "weight must be (n_dims, n_dims) and match x's feature dim"

    out_dtype = x.dtype
    if compute_dtype is not None:
        # Optional reduced-precision compute (f32 accumulation in-kernel).
        x = x.astype(compute_dtype)
        weight = weight.astype(compute_dtype)

    itemsize = jnp.dtype(x.dtype).itemsize
    cap, budget, vmem_limit, cores = _tpu_layout()

    # Bigger default batch tiles on 128 MiB-VMEM chips (v5e/v6e), 512 on v7x.
    if tm is None:
        tm = 1024 if cap >= 100 * 1024 * 1024 else 512

    # Canonical MXU orientation: one-time wrapper transpose of the small
    # weight so the kernel contracts (M,K) @ (K,N).  (Storing W^T at init,
    # since W comes from a one-time QR, would avoid even this op.)
    wT = weight.T                                    # (K, N)

    # Resident-weight feasibility: padded W^T (single VMEM copy) plus one
    # modest double-buffered X/out tile pair must fit the budget.
    Kp = K if K % 128 == 0 else _round_up(K, 128)
    Np = N if N % 128 == 0 else _round_up(N, 128)
    tm_floor = min(256, _round_up(M, 8))
    resident_min_bytes = (Kp * Np * itemsize
                          + 2 * tm_floor * Kp * itemsize
                          + 2 * tm_floor * Np * itemsize)
    use_resident = resident_min_bytes <= budget
    if _force_path == "resident":
        use_resident = True
    elif _force_path == "tiled":
        use_resident = False

    if use_resident:
        return _so_resident(x, wT, M, K, N, out_dtype, tm=tm,
                            budget=budget, vmem_limit=vmem_limit, cores=cores)
    return _so_tiled(x, wT, M, K, N, out_dtype,
                     budget=budget, vmem_limit=vmem_limit, cores=cores)


def so_layer_forward(x, weight, *, tm=None, compute_dtype=None,
                     force_pallas=False, _force_path=None):
    """SO_Layer.forward: x @ weight.T.

    Problems too small to amortize kernel launch + pipeline overhead fall back
    to a plain XLA matmul unless `force_pallas` is set.
    """
    M, K = x.shape
    N, _ = weight.shape
    tiny = (M * K * N) < (256 * 256 * 256)
    if tiny and not force_pallas:
        return jnp.dot(x, weight.T,
                       preferred_element_type=jnp.float32).astype(x.dtype)
    return _so_layer_forward_pallas(x, weight, tm=tm,
                                    compute_dtype=compute_dtype,
                                    _force_path=_force_path)


def init_so_weight(key, n_dims):
    """Deterministic re-implementation of SO_Layer.reset_():
    W = QR( N(0, 0.01).sample((n_dims, n_dims)) ).Q
    """
    normal_samples = 0.01 * jax.random.normal(key, (n_dims, n_dims), jnp.float32)
    q, _ = jnp.linalg.qr(normal_samples)
    return q


# TODO(synk): the custom backward (lie-bracket projected gradient) is not part
# of the forward pass; a jax.custom_vjp is still needed for training parity.

if __name__ == "__main__":
    n_dims = 32
    batch = 16

    key = jax.random.PRNGKey(0)
    k_w, k_x = jax.random.split(key)

    weight = init_so_weight(k_w, n_dims)                       # (32, 32)
    x = jax.random.normal(k_x, (batch, n_dims), jnp.float32)   # (16, 32)

    ref = x @ weight.T

    # Force the Pallas paths so both kernels are exercised at demo sizes.
    out_resident = so_layer_forward(x, weight, force_pallas=True,
                                    _force_path="resident")
    out_resident = jax.block_until_ready(out_resident)
    assert out_resident.shape == (batch, n_dims)
    assert jnp.allclose(out_resident, ref, atol=1e-5, rtol=1e-5)

    out_tiled = so_layer_forward(x, weight, force_pallas=True,
                                 _force_path="tiled")
    out_tiled = jax.block_until_ready(out_tiled)
    assert out_tiled.shape == (batch, n_dims)
    assert jnp.allclose(out_tiled, ref, atol=1e-5, rtol=1e-5)

    print("KERNEL_OK")
</pallas_src>

<mosaic_0001>
module attributes {stable_mosaic.version = 11 : i64} {
  func.func @_so_matmul_resident_kernel(%arg0: i32, %arg1: memref<16x128xf32, #tpu.memory_space<vmem>>, %arg2: memref<128x128xf32, #tpu.memory_space<vmem>>, %arg3: memref<16x128xf32, #tpu.memory_space<vmem>>) attributes {dimension_semantics = [#tpu.dimension_semantics<parallel>], iteration_bounds = array<i64: 1>, scalar_prefetch = 0 : i64, scratch_operands = 0 : i64, tpu.core_type = #tpu.core_type<tc>, window_params = [{transform_indices = @transform_0, window_bounds = array<i64: 16, 128>}, {pipeline_mode = #tpu.pipeline_mode<synchronous>, transform_indices = @transform_1, window_bounds = array<i64: 128, 128>}, {transform_indices = @transform_2, window_bounds = array<i64: 16, 128>}]} {
    %c0 = arith.constant 0 : index
    %c0_0 = arith.constant 0 : index
    %0 = vector.load %arg1[%c0, %c0_0] : memref<16x128xf32, #tpu.memory_space<vmem>>, vector<16x128xf32>
    %c0_1 = arith.constant 0 : index
    %c0_2 = arith.constant 0 : index
    %1 = vector.load %arg2[%c0_1, %c0_2] : memref<128x128xf32, #tpu.memory_space<vmem>>, vector<128x128xf32>
    %cst = arith.constant dense<0.000000e+00> : vector<16x128xf32>
    %2 = tpu.matmul %0, %1, %cst {dimension_numbers = #tpu.dot_dimension_numbers<[1], [0], [0], [1], [0, 0, 1, 1], [], []>} : vector<16x128xf32>, vector<128x128xf32>, vector<16x128xf32> -> vector<16x128xf32>
    %c0_3 = arith.constant 0 : index
    %c0_4 = arith.constant 0 : index
    %3 = vector.load %arg3[%c0_3, %c0_4] : memref<16x128xf32, #tpu.memory_space<vmem>>, vector<16x128xf32>
    tpu.vector_store %arg3[%c0_3, %c0_4], %2 {strides = array<i32>} : memref<16x128xf32, #tpu.memory_space<vmem>>, vector<16x128xf32>,
    return
  }
  func.func @transform_0(%arg0: i32) -> (i32, i32) {
    %c0_i32 = arith.constant 0 : i32
    %c0_i32_0 = arith.constant 0 : i32
    return %arg0, %c0_i32 : i32, i32
  }
  func.func @transform_1(%arg0: i32) -> (i32, i32) {
    %c0_i32 = arith.constant 0 : i32
    %c0_i32_0 = arith.constant 0 : i32
    %c0_i32_1 = arith.constant 0 : i32
    return %c0_i32, %c0_i32_0 : i32, i32
  }
  func.func @transform_2(%arg0: i32) -> (i32, i32) {
    %c0_i32 = arith.constant 0 : i32
    %c0_i32_0 = arith.constant 0 : i32
    return %arg0, %c0_i32 : i32, i32
  }
}

</mosaic_0001>

<bundles_post_ra>
// kernel: tpu_custom_call.1
= control target key start
LH: loop header
LB: loop body
LE: loop exit
PB: predicated region body
PF: predicated region fallthrough
CT: control target
= control target key end

     0   :  { %7 = vsyncpa [#allocation3], 0  ;;  %s380_s0 = inlined_call_operand.hbm [shape: f32[16,128], index: 0, kind: input, shape index: {}]   ;;  %s381_s1 = inlined_call_operand.hbm [shape: f32[128,128], index: 1, kind: input, shape index: {}]   ;;  %s382_s2 = inlined_call_operand.hbm [shape: f32[16,128], index: 2, kind: output, shape index: {}]  }
   0x1   :  { %8 = vsyncpa [#allocation6], 0 }
   0x2   :  { %9 = vsyncpa [#allocation4], 0  ;;  %s315_s9 = smov [#allocation2]   ;;  %s243_s13 = scalar_lea.hbm %s380_s0, 256 }
   0x3   :  { %s15_s10 = sshll.u32 %s315_s9, 4  ;;  %p244_p0 = scmp.ne.s32.totalorder %s380_s0, %s243_s13  ;;  %s16_s10 = int_to_ptr.vmem [resolvable:$true] %s15_s10 }
   0x4   :  { %p247_p1 = scmp.lt.u32.totalorder %s243_s13, %s380_s0 }
   0x6   :  { %p249_p2 = pnand %p247_p1, %p244_p0 }
   0x8   :  { %252 = shalt.err (!%p249_p2)
}
   0x9   :  { %s253_s18 = scalar_lea.vmem %s16_s10, 256  ;;  %p258_p4 = scmp.lt.s32.totalorder %s16_s10, %s16_s10 }
   0xa   :  { %p254_p3 = scmp.ne.s32.totalorder %s16_s10, %s253_s18  ;;  %p259_p5 = scmp.lt.s32.totalorder %s253_s18, %s253_s18 }
   0xc   :  { %p260_p6 = por %p259_p5, %p258_p4 }
   0xe   :  { %p261_p7 = pnand %p260_p6, %p254_p3 }
  0x10   :  { %264 = shalt.err (!%p261_p7)
}
  0x11   :  { %s316_s19 = smov 128   ;;  %s317_s20 = smov 8  }
  0x12   :  { %21 = dma.hbm_to_vmem [thread:$0]  %s380_s0, 256, %s16_s10, [#allocation3], %s316_s19, %s316_s19, %s317_s20  }
  0x13   :  { %s318_s23 = smov [#allocation5]   ;;  %s265_s27 = scalar_lea.hbm %s381_s1, 2048 }
  0x14   :  { %s27_s24 = sshll.u32 %s318_s23, 4  ;;  %p266_p8 = scmp.ne.s32.totalorder %s381_s1, %s265_s27  ;;  %s28_s24 = int_to_ptr.vmem [resolvable:$true] %s27_s24 }
  0x15   :  { %p269_p9 = scmp.lt.u32.totalorder %s265_s27, %s381_s1 }
  0x17   :  { %p271_p10 = pnand %p269_p9, %p266_p8 }
  0x19   :  { %274 = shalt.err (!%p271_p10)
}
  0x1a   :  { %s275_s4 = scalar_lea.vmem %s28_s24, 2048  ;;  %p280_p12 = scmp.lt.s32.totalorder %s28_s24, %s28_s24 }
  0x1b   :  { %p276_p11 = scmp.ne.s32.totalorder %s28_s24, %s275_s4  ;;  %p281_p13 = scmp.lt.s32.totalorder %s275_s4, %s275_s4 }
  0x1d   :  { %p282_p0 = por %p281_p13, %p280_p12 }
  0x1f   :  { %p283_p1 = pnand %p282_p0, %p276_p11 }
  0x21   :  { %286 = shalt.err (!%p283_p1)
}
  0x22   :  { %33 = dma.hbm_to_vmem [thread:$0]  %s381_s1, 2048, %s28_s24, [#allocation6], %s316_s19, %s316_s19, %s317_s20  }
  0x23   :  { %309 = dma.done.wait [#allocation3], 256  }
  0x24   :  { %310 = vsyncadd [#allocation3], 4294967040 }
  0x25   :  { %311 = dma.done.wait [#allocation6], 2048  }
  0x26   :  { %312 = vsyncadd [#allocation6], 4294965248  ;;  %v42_v0 = vld [vmem:[#allocation5] sm:$0xff]  ;;  %v43_v1 = vld [vmem:[#allocation5 + $0x8] sm:$0xff]  ;;  %s319_s1 = smov [#allocation7]  }
  0x27   :  { %v44_v2 = vld [vmem:[#allocation5 + $0x10] sm:$0xff]  ;;  %v206_v3 = vpack.c.bf16 %v43_v1, %v42_v0  ;;  %v45_v4 = vld [vmem:[#allocation5 + $0x18] sm:$0xff]  ;;  %v46_v6 = vld [vmem:[#allocation5 + $0x20] sm:$0xff]  ;;  %s140_s6 = sshll.u32 %s319_s1, 4  ;;  %s141_s6 = int_to_ptr.vmem [resolvable:$true] %s140_s6 }
  0x28   :  { %v210_v5 = vpack.c.bf16 %v45_v4, %v44_v2  ;;  %v47_v7 = vld [vmem:[#allocation5 + $0x28] sm:$0xff]  ;;  %v40_v9 = vld [vmem:[#allocation2] sm:$0xff]  ;;  %v49_v11 = vld [vmem:[#allocation5 + $0x38] sm:$0xff]  ;;  %s287_s7 = scalar_lea.vmem %s141_s6, 256  ;;  %p292_p3 = scmp.lt.s32.totalorder %s141_s6, %s141_s6 }
  0x29   :  { %207 = vmatprep.subr.bf16.mxu0 %v206_v3  ;;  %v214_v8 = vpack.c.bf16 %v47_v7, %v46_v6  ;;  %v48_v10 = vld [vmem:[#allocation5 + $0x30] sm:$0xff]  ;;  %203 = vmatprep.mubr.f32.mxu0 %v40_v9  ;;  %v50_v13 = vld [vmem:[#allocation5 + $0x40] sm:$0xff]  ;;  %v51_v14 = vld [vmem:[#allocation5 + $0x48] sm:$0xff]  ;;  %p288_p2 = scmp.ne.s32.totalorder %s141_s6, %s287_s7  ;;  %p293_p4 = scmp.lt.s32.totalorder %s287_s7, %s287_s7 }
  0x2a   :  { %209 = vmatpush3.bf16.msra.mxu0 %v206_v3  ;;  %v218_v12 = vpack.c.bf16 %v49_v11, %v48_v10  ;;  %v222_v15 = vpack.c.bf16 %v51_v14, %v50_v13  ;;  %v52_v16 = vld [vmem:[#allocation5 + $0x50] sm:$0xff]  ;;  %v53_v17 = vld [vmem:[#allocation5 + $0x58] sm:$0xff]  ;;  %v54_v19 = vld [vmem:[#allocation5 + $0x60] sm:$0xff] }
  0x2b   :  { %211 = vmatprep.subr.bf16.mxu0 %v210_v5  ;;  %v226_v18 = vpack.c.bf16 %v53_v17, %v52_v16  ;;  %v55_v20 = vld [vmem:[#allocation5 + $0x68] sm:$0xff]  ;;  %v56_v22 = vld [vmem:[#allocation5 + $0x70] sm:$0xff]  ;;  %v57_v23 = vld [vmem:[#allocation5 + $0x78] sm:$0xff]  ;;  %p294_p5 = por %p293_p4, %p292_p3 }
  0x2c   :  { %v230_v21 = vpack.c.bf16 %v55_v20, %v54_v19  ;;  %v234_v24 = vpack.c.bf16 %v57_v23, %v56_v22  ;;  %v41_v25 = vld [vmem:[#allocation2 + $0x8] sm:$0xff] }
  0x2d   :  { %p295_p6 = pnand %p294_p5, %p288_p2 }
  0x2e   :  { %213 = vmatpush3.bf16.msra.mxu0 %v210_v5 }
  0x2f   :  { %215 = vmatprep.subr.bf16.mxu0 %v214_v8 }
  0x32   :  { %217 = vmatpush3.bf16.msra.mxu0 %v214_v8 }
  0x33   :  { %219 = vmatprep.subr.bf16.mxu0 %v218_v12 }
  0x36   :  { %221 = vmatpush3.bf16.msra.mxu0 %v218_v12 }
  0x37   :  { %223 = vmatprep.subr.bf16.mxu0 %v222_v15 }
  0x3a   :  { %225 = vmatpush3.bf16.msra.mxu0 %v222_v15 }
  0x3b   :  { %227 = vmatprep.subr.bf16.mxu0 %v226_v18 }
  0x3e   :  { %229 = vmatpush3.bf16.msra.mxu0 %v226_v18 }
  0x3f   :  { %231 = vmatprep.subr.bf16.mxu0 %v230_v21 }
  0x42   :  { %233 = vmatpush3.bf16.msra.mxu0 %v230_v21 }
  0x43   :  { %235 = vmatprep.subr.bf16.mxu0 %v234_v24 }
  0x46   :  { %237 = vmatpush3.bf16.msra.mxu0 %v234_v24 }
  0x49   :  { %204 = vmatmul.mubr.f32.vlgmr.msra.gmra.mrb[0].mxu0 %v41_v25 }
 0x11c   :  { %v205_v26 = vpop.f32.mrb[0].mxu0 }
 0x11d   :  { %134 = vst [vmem:[#allocation7 + $0x8] sm:$0xff] %v205_v26  ;;  %v124_v27 = vpop.f32.mrb[1].mxu0 }
 0x11e   :  { %133 = vst [vmem:[#allocation7] sm:$0xff] %v124_v27 }
 0x11f   :  { %298 = shalt.err (!%p295_p6)
}
 0x120   :  { %s299_s10 = scalar_lea.hbm %s382_s2, 256 }
 0x121   :  { %p300_p7 = scmp.ne.s32.totalorder %s382_s2, %s299_s10  ;;  %p303_p8 = scmp.lt.u32.totalorder %s299_s10, %s382_s2 }
 0x123   :  { %p305_p9 = pnand %p303_p8, %p300_p7 }
 0x125   :  { %308 = shalt.err (!%p305_p9)
}
 0x126   :  { %146 = dma.vmem_to_hbm [thread:$0]  %s141_s6, 256, %s382_s2, [#allocation4], %s316_s19, %s316_s19, %s317_s20  }
 0x127   :  { %313 = dma.done.wait [#allocation4], 256  }
 0x128   :  { %314 = vsyncadd [#allocation4], 4294967040 }
 0x129   :  { %150 = vsyncpa [#allocation3], 1 }
 0x12a   :  { %151 = vsyncpa [#allocation6], 1 }
 0x12b   :  { %152 = vsyncpa [#allocation4], 1 }

</bundles_post_ra>
